<compile_context>
chip_gen: v7x
topology: tpu7x:2x2x1
jax: 0.10.0
libtpu: 0.0.40
codegen_flags: <defaults>
</compile_context>

<pallas_src>
import jax
import jax.numpy as jnp
from jax.experimental import pallas as pl
from jax.experimental.pallas import tpu as pltpu

HIDDEN = 512
_LANE = 128
_SUBLANE = 8
_EPS = 1e-5  # torch.nn.LayerNorm default


def _round_up(x, m):
    return (x + m - 1) // m * m


def _ln_relu(h, gamma_bf16, beta_bf16):
    """One-pass LayerNorm stats in f32; affine + ReLU in bf16.

    Returns bf16 so the result feeds the next MXU matmul with no extra cast.
    """
    n = h.shape[-1]
    s = jnp.sum(h, axis=-1, keepdims=True)
    ss = jnp.sum(h * h, axis=-1, keepdims=True)
    mu = s * (1.0 / n)
    var = jnp.maximum(ss * (1.0 / n) - mu * mu, 0.0)
    y = ((h - mu) * jax.lax.rsqrt(var + _EPS)).astype(jnp.bfloat16)
    return jnp.maximum(y * gamma_bf16 + beta_bf16, 0.0)


def actor_kernel(x_ref, w1_ref, v1_ref, w2_ref, v2_ref, w3_ref, b3_ref, o_ref):
    # x_ref: (tb, state_dim) f32 ; w1: f32 ; w2/w3: bf16 ; v*/b3/out: f32.
    v1 = v1_ref[...]
    v2 = v2_ref[...]

    # layer 1: Linear (f32 MXU; K = state_dim is tiny) -> LayerNorm -> ReLU
    h = jnp.dot(x_ref[...], w1_ref[...], preferred_element_type=jnp.float32)
    h = h + v1[0:1, :]
    h = _ln_relu(h, v1[1:2, :].astype(jnp.bfloat16),
                 v1[2:3, :].astype(jnp.bfloat16))

    # layer 2: Linear (bf16 MXU operands, f32 acc) -> LayerNorm -> ReLU
    h = jnp.dot(h, w2_ref[...], preferred_element_type=jnp.float32)
    h = h + v2[0:1, :]
    h = _ln_relu(h, v2[1:2, :].astype(jnp.bfloat16),
                 v2[2:3, :].astype(jnp.bfloat16))

    # output layer (lane-dense, padded to 128 cols) -> tanh
    a = jnp.dot(h, w3_ref[...], preferred_element_type=jnp.float32)
    o_ref[...] = jnp.tanh(a + b3_ref[...])


def _choose_tile(batch, block_b):
    """Batch tile: amortize per-step overhead, but keep grid >= 2 (v7x has
    two TensorCores and the grid axis is marked "parallel")."""
    if batch <= _SUBLANE:
        return batch                      # single full-array block
    half = _round_up(pl.cdiv(batch, 2), _SUBLANE)
    return max(_SUBLANE, min(block_b, half))


def actor_forward(state, params, *, block_b=1024):
    """state: (B, state_dim) f32 -> action: (B, action_dim) f32."""
    B, state_dim = state.shape
    d_out_pad = params["w3"].shape[1]
    action_dim = params["action_dim"]

    tb = _choose_tile(B, block_b)
    grid = (pl.cdiv(B, tb),)

    flops = 2 * B * (state_dim * HIDDEN + HIDDEN * HIDDEN + HIDDEN * d_out_pad)
    bytes_accessed = (
        state.size * 4
        + params["w1"].size * 4
        + (params["w2"].size + params["w3"].size) * 2
        + (params["v1"].size + params["v2"].size + params["b3"].size) * 4
        + B * d_out_pad * 4
    )
    cost = pl.CostEstimate(
        flops=int(flops),
        transcendentals=int(B * (d_out_pad + 2)),
        bytes_accessed=int(bytes_accessed),
    )

    def resident(shape):
        # Same block every grid step -> fetched once, stays VMEM-resident.
        return pl.BlockSpec(shape, lambda i: (0, 0))

    out = pl.pallas_call(
        actor_kernel,
        out_shape=jax.ShapeDtypeStruct((B, d_out_pad), jnp.float32),
        grid=grid,
        in_specs=[
            pl.BlockSpec((tb, state_dim), lambda i: (i, 0)),   # batch-tiled
            resident(params["w1"].shape),
            resident(params["v1"].shape),
            resident(params["w2"].shape),
            resident(params["v2"].shape),
            resident(params["w3"].shape),
            resident(params["b3"].shape),
        ],
        out_specs=pl.BlockSpec((tb, d_out_pad), lambda i: (i, 0)),
        compiler_params=pltpu.CompilerParams(
            dimension_semantics=("parallel",),
            # Large tiles exceed v5e's 16 MiB default scoped-VMEM limit;
            # 48 MiB leaves headroom everywhere (v7x physical = 64 MiB).
            vmem_limit_bytes=48 * 1024 * 1024,
        ),
        cost_estimate=cost,
    )(state, params["w1"], params["v1"], params["v2"] if False else params["v2"], params["v2"], params["w3"], params["b3"]) if False else pl.pallas_call(
        actor_kernel,
        out_shape=jax.ShapeDtypeStruct((B, d_out_pad), jnp.float32),
        grid=grid,
        in_specs=[
            pl.BlockSpec((tb, state_dim), lambda i: (i, 0)),
            resident(params["w1"].shape),
            resident(params["v1"].shape),
            resident(params["w2"].shape),
            resident(params["v2"].shape),
            resident(params["w3"].shape),
            resident(params["b3"].shape),
        ],
        out_specs=pl.BlockSpec((tb, d_out_pad), lambda i: (i, 0)),
        compiler_params=pltpu.CompilerParams(
            dimension_semantics=("parallel",),
            vmem_limit_bytes=48 * 1024 * 1024,
        ),
        cost_estimate=cost,
    )(state, params["w1"], params["v1"], params["w2"], params["v2"],
      params["w3"], params["b3"])

    return out[:, :action_dim]


def xavier_uniform(key, fan_in, fan_out):
    # torch.nn.init.xavier_uniform_ on Linear weight (out, in); produced
    # directly in the transposed (in, out) layout used by the kernel.
    bound = jnp.sqrt(6.0 / (fan_in + fan_out))
    return jax.random.uniform(key, (fan_in, fan_out), jnp.float32,
                              minval=-bound, maxval=bound)


def init_actor_params(key, state_dim, action_dim):
    d_out_pad = _round_up(action_dim, _LANE)
    k1, k2, k3 = jax.random.split(key, 3)

    w1 = xavier_uniform(k1, state_dim, HIDDEN)                 # f32, unpadded K
    w2 = xavier_uniform(k2, HIDDEN, HIDDEN).astype(jnp.bfloat16)
    w3 = jnp.zeros((HIDDEN, d_out_pad), jnp.float32)
    w3 = w3.at[:, :action_dim].set(xavier_uniform(k3, HIDDEN, action_dim))

    # Packed per-layer small vectors: row 0 = bias, row 1 = gamma, row 2 = beta.
    packed = jnp.stack([jnp.zeros(HIDDEN), jnp.ones(HIDDEN),
                        jnp.zeros(HIDDEN)]).astype(jnp.float32)

    return {
        "w1": w1,
        "w2": w2,
        "w3": w3.astype(jnp.bfloat16),
        "v1": packed,
        "v2": packed,
        "b3": jnp.zeros((1, d_out_pad), jnp.float32),
        "state_dim": state_dim,
        "action_dim": action_dim,
    }


def actor_forward_ref(state, params):
    """Pure-JAX reference replicating the kernel math."""
    h = jnp.dot(state, params["w1"], preferred_element_type=jnp.float32)
    h = h + params["v1"][0:1]
    h = _ln_relu(h, params["v1"][1:2].astype(jnp.bfloat16),
                 params["v1"][2:3].astype(jnp.bfloat16))

    h = jnp.dot(h, params["w2"], preferred_element_type=jnp.float32)
    h = h + params["v2"][0:1]
    h = _ln_relu(h, params["v2"][1:2].astype(jnp.bfloat16),
                 params["v2"][2:3].astype(jnp.bfloat16))

    a = jnp.dot(h, params["w3"], preferred_element_type=jnp.float32)
    return jnp.tanh(a + params["b3"])[:, :params["action_dim"]]


if __name__ == "__main__":
    state_dim, action_dim, batch = 24, 8, 8

    key = jax.random.PRNGKey(0)
    kp, ks = jax.random.split(key)

    params = init_actor_params(kp, state_dim, action_dim)
    state = jax.random.normal(ks, (batch, state_dim), jnp.float32)

    action = actor_forward(state, params)
    action = jax.block_until_ready(action)

    ref = actor_forward_ref(state, params)
    assert action.shape == (batch, action_dim)
    assert bool(jnp.all(jnp.abs(action) <= 1.0))  # tanh range
    assert jnp.allclose(action, ref, atol=2e-3, rtol=2e-3), float(
        jnp.max(jnp.abs(action - ref)))

    print("KERNEL_OK")
</pallas_src>

<mosaic_0001>
module attributes {stable_mosaic.version = 11 : i64} {
  func.func @actor_kernel(%arg0: i32, %arg1: memref<8x24xf32, #tpu.memory_space<vmem>>, %arg2: memref<24x512xf32, #tpu.memory_space<vmem>>, %arg3: memref<3x512xf32, #tpu.memory_space<vmem>>, %arg4: memref<512x512xbf16, #tpu.memory_space<vmem>>, %arg5: memref<3x512xf32, #tpu.memory_space<vmem>>, %arg6: memref<512x128xbf16, #tpu.memory_space<vmem>>, %arg7: memref<1x128xf32, #tpu.memory_space<vmem>>, %arg8: memref<8x128xf32, #tpu.memory_space<vmem>>) attributes {dimension_semantics = [#tpu.dimension_semantics<parallel>], iteration_bounds = array<i64: 1>, scalar_prefetch = 0 : i64, scratch_operands = 0 : i64, tpu.core_type = #tpu.core_type<tc>, window_params = [{transform_indices = @transform_0, window_bounds = array<i64: 8, 24>}, {pipeline_mode = #tpu.pipeline_mode<synchronous>, transform_indices = @transform_1, window_bounds = array<i64: 24, 512>}, {pipeline_mode = #tpu.pipeline_mode<synchronous>, transform_indices = @transform_2, window_bounds = array<i64: 3, 512>}, {pipeline_mode = #tpu.pipeline_mode<synchronous>, transform_indices = @transform_3, window_bounds = array<i64: 512, 512>}, {pipeline_mode = #tpu.pipeline_mode<synchronous>, transform_indices = @transform_4, window_bounds = array<i64: 3, 512>}, {pipeline_mode = #tpu.pipeline_mode<synchronous>, transform_indices = @transform_5, window_bounds = array<i64: 512, 128>}, {pipeline_mode = #tpu.pipeline_mode<synchronous>, transform_indices = @transform_6, window_bounds = array<i64: 1, 128>}, {transform_indices = @transform_7, window_bounds = array<i64: 8, 128>}]} {
    %c0 = arith.constant 0 : index
    %c0_0 = arith.constant 0 : index
    %0 = vector.load %arg3[%c0, %c0_0] : memref<3x512xf32, #tpu.memory_space<vmem>>, vector<3x512xf32>
    %c0_1 = arith.constant 0 : index
    %c0_2 = arith.constant 0 : index
    %1 = vector.load %arg5[%c0_1, %c0_2] : memref<3x512xf32, #tpu.memory_space<vmem>>, vector<3x512xf32>
    %c0_3 = arith.constant 0 : index
    %c0_4 = arith.constant 0 : index
    %2 = vector.load %arg1[%c0_3, %c0_4] : memref<8x24xf32, #tpu.memory_space<vmem>>, vector<8x24xf32>
    %c0_5 = arith.constant 0 : index
    %c0_6 = arith.constant 0 : index
    %3 = vector.load %arg2[%c0_5, %c0_6] : memref<24x512xf32, #tpu.memory_space<vmem>>, vector<24x512xf32>
    %cst = arith.constant dense<0.000000e+00> : vector<8x512xf32>
    %4 = tpu.matmul %2, %3, %cst {dimension_numbers = #tpu.dot_dimension_numbers<[1], [0], [0], [1], [0, 0, 1, 1], [], []>} : vector<8x24xf32>, vector<24x512xf32>, vector<8x512xf32> -> vector<8x512xf32>
    %5 = vector.extract_strided_slice %0 {offsets = [0, 0], sizes = [1, 512], strides = [1, 1]} : vector<3x512xf32> to vector<1x512xf32>
    %6 = vector.broadcast %5 : vector<1x512xf32> to vector<8x512xf32>
    %7 = arith.addf %4, %6 : vector<8x512xf32>
    %8 = vector.extract_strided_slice %0 {offsets = [1, 0], sizes = [1, 512], strides = [1, 1]} : vector<3x512xf32> to vector<1x512xf32>
    %9 = arith.truncf %8 : vector<1x512xf32> to vector<1x512xbf16>
    %10 = vector.extract_strided_slice %0 {offsets = [2, 0], sizes = [1, 512], strides = [1, 1]} : vector<3x512xf32> to vector<1x512xf32>
    %11 = arith.truncf %10 : vector<1x512xf32> to vector<1x512xbf16>
    %cst_7 = arith.constant dense<0.000000e+00> : vector<8xf32>
    %12 = vector.multi_reduction <add>, %7, %cst_7 [1] : vector<8x512xf32> to vector<8xf32>
    %13 = vector.shape_cast %12 : vector<8xf32> to vector<8x1xf32>
    %14 = arith.mulf %7, %7 : vector<8x512xf32>
    %cst_8 = arith.constant dense<0.000000e+00> : vector<8xf32>
    %15 = vector.multi_reduction <add>, %14, %cst_8 [1] : vector<8x512xf32> to vector<8xf32>
    %16 = vector.shape_cast %15 : vector<8xf32> to vector<8x1xf32>
    %cst_9 = arith.constant 0.001953125 : f32
    %17 = vector.broadcast %cst_9 : f32 to vector<8x1xf32>
    %18 = arith.mulf %13, %17 : vector<8x1xf32>
    %cst_10 = arith.constant 0.001953125 : f32
    %19 = vector.broadcast %cst_10 : f32 to vector<8x1xf32>
    %20 = arith.mulf %16, %19 : vector<8x1xf32>
    %21 = arith.mulf %18, %18 : vector<8x1xf32>
    %22 = arith.subf %20, %21 : vector<8x1xf32>
    %cst_11 = arith.constant 0.000000e+00 : f32
    %23 = vector.broadcast %cst_11 : f32 to vector<8x1xf32>
    %24 = arith.maximumf %22, %23 : vector<8x1xf32>
    %25 = vector.broadcast %18 : vector<8x1xf32> to vector<8x512xf32>
    %26 = arith.subf %7, %25 : vector<8x512xf32>
    %cst_12 = arith.constant 9.99999974E-6 : f32
    %27 = vector.broadcast %cst_12 : f32 to vector<8x1xf32>
    %28 = arith.addf %24, %27 : vector<8x1xf32>
    %29 = math.rsqrt %28 : vector<8x1xf32>
    %30 = vector.broadcast %29 : vector<8x1xf32> to vector<8x512xf32>
    %31 = arith.mulf %26, %30 : vector<8x512xf32>
    %32 = arith.truncf %31 : vector<8x512xf32> to vector<8x512xbf16>
    %33 = vector.broadcast %9 : vector<1x512xbf16> to vector<8x512xbf16>
    %34 = arith.mulf %32, %33 : vector<8x512xbf16>
    %35 = vector.broadcast %11 : vector<1x512xbf16> to vector<8x512xbf16>
    %36 = arith.addf %34, %35 : vector<8x512xbf16>
    %cst_13 = arith.constant 0.000000e+00 : bf16
    %37 = vector.broadcast %cst_13 : bf16 to vector<8x512xbf16>
    %38 = arith.maximumf %36, %37 : vector<8x512xbf16>
    %c0_14 = arith.constant 0 : index
    %c0_15 = arith.constant 0 : index
    %39 = vector.load %arg4[%c0_14, %c0_15] : memref<512x512xbf16, #tpu.memory_space<vmem>>, vector<512x512xbf16>
    %cst_16 = arith.constant dense<0.000000e+00> : vector<8x512xf32>
    %40 = tpu.matmul %38, %39, %cst_16 {dimension_numbers = #tpu.dot_dimension_numbers<[1], [0], [0], [1], [0, 0, 1, 1], [], []>} : vector<8x512xbf16>, vector<512x512xbf16>, vector<8x512xf32> -> vector<8x512xf32>
    %41 = vector.extract_strided_slice %1 {offsets = [0, 0], sizes = [1, 512], strides = [1, 1]} : vector<3x512xf32> to vector<1x512xf32>
    %42 = vector.broadcast %41 : vector<1x512xf32> to vector<8x512xf32>
    %43 = arith.addf %40, %42 : vector<8x512xf32>
    %44 = vector.extract_strided_slice %1 {offsets = [1, 0], sizes = [1, 512], strides = [1, 1]} : vector<3x512xf32> to vector<1x512xf32>
    %45 = arith.truncf %44 : vector<1x512xf32> to vector<1x512xbf16>
    %46 = vector.extract_strided_slice %1 {offsets = [2, 0], sizes = [1, 512], strides = [1, 1]} : vector<3x512xf32> to vector<1x512xf32>
    %47 = arith.truncf %46 : vector<1x512xf32> to vector<1x512xbf16>
    %cst_17 = arith.constant dense<0.000000e+00> : vector<8xf32>
    %48 = vector.multi_reduction <add>, %43, %cst_17 [1] : vector<8x512xf32> to vector<8xf32>
    %49 = vector.shape_cast %48 : vector<8xf32> to vector<8x1xf32>
    %50 = arith.mulf %43, %43 : vector<8x512xf32>
    %cst_18 = arith.constant dense<0.000000e+00> : vector<8xf32>
    %51 = vector.multi_reduction <add>, %50, %cst_18 [1] : vector<8x512xf32> to vector<8xf32>
    %52 = vector.shape_cast %51 : vector<8xf32> to vector<8x1xf32>
    %cst_19 = arith.constant 0.001953125 : f32
    %53 = vector.broadcast %cst_19 : f32 to vector<8x1xf32>
    %54 = arith.mulf %49, %53 : vector<8x1xf32>
    %cst_20 = arith.constant 0.001953125 : f32
    %55 = vector.broadcast %cst_20 : f32 to vector<8x1xf32>
    %56 = arith.mulf %52, %55 : vector<8x1xf32>
    %57 = arith.mulf %54, %54 : vector<8x1xf32>
    %58 = arith.subf %56, %57 : vector<8x1xf32>
    %cst_21 = arith.constant 0.000000e+00 : f32
    %59 = vector.broadcast %cst_21 : f32 to vector<8x1xf32>
    %60 = arith.maximumf %58, %59 : vector<8x1xf32>
    %61 = vector.broadcast %54 : vector<8x1xf32> to vector<8x512xf32>
    %62 = arith.subf %43, %61 : vector<8x512xf32>
    %cst_22 = arith.constant 9.99999974E-6 : f32
    %63 = vector.broadcast %cst_22 : f32 to vector<8x1xf32>
    %64 = arith.addf %60, %63 : vector<8x1xf32>
    %65 = math.rsqrt %64 : vector<8x1xf32>
    %66 = vector.broadcast %65 : vector<8x1xf32> to vector<8x512xf32>
    %67 = arith.mulf %62, %66 : vector<8x512xf32>
    %68 = arith.truncf %67 : vector<8x512xf32> to vector<8x512xbf16>
    %69 = vector.broadcast %45 : vector<1x512xbf16> to vector<8x512xbf16>
    %70 = arith.mulf %68, %69 : vector<8x512xbf16>
    %71 = vector.broadcast %47 : vector<1x512xbf16> to vector<8x512xbf16>
    %72 = arith.addf %70, %71 : vector<8x512xbf16>
    %cst_23 = arith.constant 0.000000e+00 : bf16
    %73 = vector.broadcast %cst_23 : bf16 to vector<8x512xbf16>
    %74 = arith.maximumf %72, %73 : vector<8x512xbf16>
    %c0_24 = arith.constant 0 : index
    %c0_25 = arith.constant 0 : index
    %75 = vector.load %arg6[%c0_24, %c0_25] : memref<512x128xbf16, #tpu.memory_space<vmem>>, vector<512x128xbf16>
    %cst_26 = arith.constant dense<0.000000e+00> : vector<8x128xf32>
    %76 = tpu.matmul %74, %75, %cst_26 {dimension_numbers = #tpu.dot_dimension_numbers<[1], [0], [0], [1], [0, 0, 1, 1], [], []>} : vector<8x512xbf16>, vector<512x128xbf16>, vector<8x128xf32> -> vector<8x128xf32>
    %c0_27 = arith.constant 0 : index
    %c0_28 = arith.constant 0 : index
    %77 = vector.load %arg7[%c0_27, %c0_28] : memref<1x128xf32, #tpu.memory_space<vmem>>, vector<1x128xf32>
    %78 = vector.broadcast %77 : vector<1x128xf32> to vector<8x128xf32>
    %79 = arith.addf %76, %78 : vector<8x128xf32>
    %80 = math.tanh %79 : vector<8x128xf32>
    %c0_29 = arith.constant 0 : index
    %c0_30 = arith.constant 0 : index
    %81 = vector.load %arg8[%c0_29, %c0_30] : memref<8x128xf32, #tpu.memory_space<vmem>>, vector<8x128xf32>
    tpu.vector_store %arg8[%c0_29, %c0_30], %80 {strides = array<i32>} : memref<8x128xf32, #tpu.memory_space<vmem>>, vector<8x128xf32>,
    return
  }
  func.func @transform_0(%arg0: i32) -> (i32, i32) {
    %c0_i32 = arith.constant 0 : i32
    %c0_i32_0 = arith.constant 0 : i32
    return %arg0, %c0_i32 : i32, i32
  }
  func.func @transform_1(%arg0: i32) -> (i32, i32) {
    %c0_i32 = arith.constant 0 : i32
    %c0_i32_0 = arith.constant 0 : i32
    %c0_i32_1 = arith.constant 0 : i32
    return %c0_i32, %c0_i32_0 : i32, i32
  }
  func.func @transform_2(%arg0: i32) -> (i32, i32) {
    %c0_i32 = arith.constant 0 : i32
    %c0_i32_0 = arith.constant 0 : i32
    %c0_i32_1 = arith.constant 0 : i32
    return %c0_i32, %c0_i32_0 : i32, i32
  }
  func.func @transform_3(%arg0: i32) -> (i32, i32) {
    %c0_i32 = arith.constant 0 : i32
    %c0_i32_0 = arith.constant 0 : i32
    %c0_i32_1 = arith.constant 0 : i32
    return %c0_i32, %c0_i32_0 : i32, i32
  }
  func.func @transform_4(%arg0: i32) -> (i32, i32) {
    %c0_i32 = arith.constant 0 : i32
    %c0_i32_0 = arith.constant 0 : i32
    %c0_i32_1 = arith.constant 0 : i32
    return %c0_i32, %c0_i32_0 : i32, i32
  }
  func.func @transform_5(%arg0: i32) -> (i32, i32) {
    %c0_i32 = arith.constant 0 : i32
    %c0_i32_0 = arith.constant 0 : i32
    %c0_i32_1 = arith.constant 0 : i32
    return %c0_i32, %c0_i32_0 : i32, i32
  }
  func.func @transform_6(%arg0: i32) -> (i32, i32) {
    %c0_i32 = arith.constant 0 : i32
    %c0_i32_0 = arith.constant 0 : i32
    %c0_i32_1 = arith.constant 0 : i32
    return %c0_i32, %c0_i32_0 : i32, i32
  }
  func.func @transform_7(%arg0: i32) -> (i32, i32) {
    %c0_i32 = arith.constant 0 : i32
    %c0_i32_0 = arith.constant 0 : i32
    return %arg0, %c0_i32 : i32, i32
  }
}

</mosaic_0001>

<bundles_post_ra>
// kernel: tpu_custom_call.1
= control target key start
LH: loop header
LB: loop body
LE: loop exit
PB: predicated region body
PF: predicated region fallthrough
CT: control target
= control target key end

     0   :  { %12 = vsyncpa [#allocation3], 0  ;;  %s2889_s0 = inlined_call_operand.hbm [shape: f32[8,24], index: 0, kind: input, shape index: {}]   ;;  %s2890_s1 = inlined_call_operand.hbm [shape: f32[24,512], index: 1, kind: input, shape index: {}]   ;;  %s2891_s2 = inlined_call_operand.hbm [shape: f32[3,512], index: 2, kind: input, shape index: {}]   ;;  %s2892_s3 = inlined_call_operand.hbm [shape: bf16[512,512], index: 3, kind: input, shape index: {}]   ;;  %s2893_s4 = inlined_call_operand.hbm [shape: f32[3,512], index: 4, kind: input, shape index: {}]   ;;  %s2894_s5 = inlined_call_operand.hbm [shape: bf16[512,128], index: 5, kind: input, shape index: {}]   ;;  %s2895_s6 = inlined_call_operand.vmem [shape: f32[1,128], index: 6, kind: input, shape index: {}]   ;;  %s2896_s7 = inlined_call_operand.hbm [shape: f32[8,128], index: 7, kind: output, shape index: {}]  }
   0x1   :  { %13 = vsyncpa [#allocation6], 0 }
   0x2   :  { %14 = vsyncpa [#allocation9], 0 }
   0x3   :  { %15 = vsyncpa [#allocation12], 0 }
   0x4   :  { %16 = vsyncpa [#allocation4], 0  ;;  %s2580_s24 = smov [#allocation5]   ;;  %s2416_s28 = scalar_lea.hbm %s2890_s1, 1536 }
   0x5   :  { %s32_s25 = sshll.u32 %s2580_s24, 4  ;;  %p2417_p0 = scmp.ne.s32.totalorder %s2890_s1, %s2416_s28  ;;  %s33_s25 = int_to_ptr.vmem [resolvable:$true] %s32_s25 }
   0x6   :  { %p2420_p1 = scmp.lt.u32.totalorder %s2416_s28, %s2890_s1 }
   0x8   :  { %p2422_p2 = pnand %p2420_p1, %p2417_p0 }
   0xa   :  { %2425 = shalt.err (!%p2422_p2)
}
   0xb   :  { %s2426_s10 = scalar_lea.vmem %s33_s25, 1536  ;;  %p2431_p4 = scmp.lt.s32.totalorder %s33_s25, %s33_s25 }
   0xc   :  { %p2427_p3 = scmp.ne.s32.totalorder %s33_s25, %s2426_s10  ;;  %p2432_p5 = scmp.lt.s32.totalorder %s2426_s10, %s2426_s10 }
   0xe   :  { %p2433_p6 = por %p2432_p5, %p2431_p4 }
  0x10   :  { %p2434_p7 = pnand %p2433_p6, %p2427_p3 }
  0x12   :  { %2437 = shalt.err (!%p2434_p7)
}
  0x13   :  { %s2581_s11 = smov 512   ;;  %s2582_s12 = smov 32  }
  0x14   :  { %38 = dma.hbm_to_vmem [thread:$0]  %s2890_s1, 1536, %s33_s25, [#allocation6], %s2581_s11, %s2581_s11, %s2582_s12  }
  0x15   :  { %s2583_s15 = smov [#allocation8]   ;;  %s2438_s19 = scalar_lea.hbm %s2892_s3, 16384 }
  0x16   :  { %s54_s16 = sshll.u32 %s2583_s15, 4  ;;  %p2439_p8 = scmp.ne.s32.totalorder %s2892_s3, %s2438_s19  ;;  %s55_s16 = int_to_ptr.vmem [resolvable:$true] %s54_s16 }
  0x17   :  { %p2442_p9 = scmp.lt.u32.totalorder %s2438_s19, %s2892_s3 }
  0x19   :  { %p2444_p10 = pnand %p2442_p9, %p2439_p8 }
  0x1b   :  { %2447 = shalt.err (!%p2444_p10)
}
  0x1c   :  { %s2448_s24 = scalar_lea.vmem %s55_s16, 16384  ;;  %p2453_p12 = scmp.lt.s32.totalorder %s55_s16, %s55_s16 }
  0x1d   :  { %p2449_p11 = scmp.ne.s32.totalorder %s55_s16, %s2448_s24  ;;  %p2454_p13 = scmp.lt.s32.totalorder %s2448_s24, %s2448_s24 }
  0x1f   :  { %p2455_p0 = por %p2454_p13, %p2453_p12 }
  0x21   :  { %p2456_p1 = pnand %p2455_p0, %p2449_p11 }
  0x23   :  { %2459 = shalt.err (!%p2456_p1)
}
  0x24   :  { %s2584_s1 = smov 256   ;;  %s2585_s25 = smov 16  }
  0x25   :  { %60 = dma.hbm_to_vmem [thread:$0]  %s2892_s3, 16384, %s55_s16, [#allocation9], %s2584_s1, %s2584_s1, %s2585_s25  }
  0x26   :  { %s2586_s28 = smov [#allocation2]   ;;  %s2587_s30 = smov [#allocation7]  }
  0x27   :  { %s23_s29 = sshll.u32 %s2586_s28, 4  ;;  %s45_s8 = sshll.u32 %s2587_s30, 4  ;;  %s24_s29 = int_to_ptr.vmem [resolvable:$true] %s23_s29  ;;  %s46_s8 = int_to_ptr.vmem [resolvable:$true] %s45_s8 }
  0x28   :  { %s2460_s11 = scalar_lea.hbm %s2889_s0, 128 }
  0x29   :  { %p2461_p2 = scmp.ne.s32.totalorder %s2889_s0, %s2460_s11  ;;  %p2464_p3 = scmp.lt.u32.totalorder %s2460_s11, %s2889_s0 }
  0x2b   :  { %p2466_p4 = pnand %p2464_p3, %p2461_p2 }
  0x2d   :  { %2469 = shalt.err (!%p2466_p4)
}
  0x2e   :  { %s2470_s3 = scalar_lea.vmem %s24_s29, 128  ;;  %p2475_p6 = scmp.lt.s32.totalorder %s24_s29, %s24_s29 }
  0x2f   :  { %p2471_p5 = scmp.ne.s32.totalorder %s24_s29, %s2470_s3  ;;  %p2476_p7 = scmp.lt.s32.totalorder %s2470_s3, %s2470_s3 }
  0x31   :  { %p2477_p8 = por %p2476_p7, %p2475_p6 }
  0x33   :  { %p2478_p9 = pnand %p2477_p8, %p2471_p5 }
  0x35   :  { %2481 = shalt.err (!%p2478_p9)
}
  0x36   :  { %26 = dma.hbm_to_vmem [thread:$0]  %s2889_s0, 128, %s24_s29, [#allocation3]  }
  0x37   :  { %s2482_s20 = scalar_lea.hbm %s2891_s2, 256 }
  0x38   :  { %p2483_p10 = scmp.ne.s32.totalorder %s2891_s2, %s2482_s20  ;;  %p2486_p11 = scmp.lt.u32.totalorder %s2482_s20, %s2891_s2 }
  0x3a   :  { %p2488_p12 = pnand %p2486_p11, %p2483_p10 }
  0x3c   :  { %2491 = shalt.err (!%p2488_p12)
}
  0x3d   :  { %s2492_s1 = scalar_lea.vmem %s46_s8, 256  ;;  %p2497_p0 = scmp.lt.s32.totalorder %s46_s8, %s46_s8 }
  0x3e   :  { %p2493_p13 = scmp.ne.s32.totalorder %s46_s8, %s2492_s1  ;;  %p2498_p1 = scmp.lt.s32.totalorder %s2492_s1, %s2492_s1 }
  0x40   :  { %p2499_p2 = por %p2498_p1, %p2497_p0 }
  0x42   :  { %p2500_p3 = pnand %p2499_p2, %p2493_p13 }
  0x44   :  { %2503 = shalt.err (!%p2500_p3)
}
  0x45   :  { %48 = dma.hbm_to_vmem [thread:$0]  %s2891_s2, 256, %s46_s8, [#allocation6]  }
  0x46   :  { %s2588_s26 = smov [#allocation10]   ;;  %s2589_s28 = smov [#allocation11]  }
  0x47   :  { %s67_s27 = sshll.u32 %s2588_s26, 4  ;;  %s76_s29 = sshll.u32 %s2589_s28, 4  ;;  %s68_s27 = int_to_ptr.vmem [resolvable:$true] %s67_s27  ;;  %s2683_s29 = int_to_ptr.vmem [resolvable:$true] %s76_s29 }
  0x48   :  { %s2504_s10 = scalar_lea.hbm %s2893_s4, 256 }
  0x49   :  { %p2505_p4 = scmp.ne.s32.totalorder %s2893_s4, %s2504_s10  ;;  %p2508_p5 = scmp.lt.u32.totalorder %s2504_s10, %s2893_s4 }
  0x4b   :  { %p2510_p6 = pnand %p2508_p5, %p2505_p4 }
  0x4d   :  { %2513 = shalt.err (!%p2510_p6)
}
  0x4e   :  { %s2514_s2 = scalar_lea.vmem %s68_s27, 256  ;;  %p2519_p8 = scmp.lt.s32.totalorder %s68_s27, %s68_s27 }
  0x4f   :  { %p2515_p7 = scmp.ne.s32.totalorder %s68_s27, %s2514_s2  ;;  %p2520_p9 = scmp.lt.s32.totalorder %s2514_s2, %s2514_s2 }
  0x51   :  { %p2521_p10 = por %p2520_p9, %p2519_p8 }
  0x53   :  { %p2522_p11 = pnand %p2521_p10, %p2515_p7 }
  0x55   :  { %2525 = shalt.err (!%p2522_p11)
}
  0x56   :  { %70 = dma.hbm_to_vmem [thread:$0]  %s2893_s4, 256, %s68_s27, [#allocation9]  }
  0x57   :  { %s2526_s17 = scalar_lea.hbm %s2894_s5, 4096 }
  0x58   :  { %p2527_p12 = scmp.ne.s32.totalorder %s2894_s5, %s2526_s17  ;;  %p2530_p13 = scmp.lt.u32.totalorder %s2526_s17, %s2894_s5 }
  0x5a   :  { %p2532_p0 = pnand %p2530_p13, %p2527_p12 }
  0x5c   :  { %2535 = shalt.err (!%p2532_p0)
}
  0x5d   :  { %s2536_s22 = scalar_lea.vmem %s2683_s29, 4096  ;;  %p2541_p2 = scmp.lt.s32.totalorder %s2683_s29, %s2683_s29 }
  0x5e   :  { %p2537_p1 = scmp.ne.s32.totalorder %s2683_s29, %s2536_s22  ;;  %p2542_p3 = scmp.lt.s32.totalorder %s2536_s22, %s2536_s22 }
  0x60   :  { %p2543_p4 = por %p2542_p3, %p2541_p2 }
  0x62   :  { %p2544_p5 = pnand %p2543_p4, %p2537_p1 }
  0x64   :  { %2547 = shalt.err (!%p2544_p5)
}
  0x65   :  { %s2590_s4 = smov 64   ;;  %s2591_s23 = smov 4  }
  0x66   :  { %82 = dma.hbm_to_vmem [thread:$0]  %s2894_s5, 4096, %s2683_s29, [#allocation12], %s2590_s4, %s2590_s4, %s2591_s23  }
  0x67   :  { %2570 = dma.done.wait [#allocation3], 128  }
  0x68   :  { %2571 = vsyncadd [#allocation3], 4294967168 }
  0x69   :  { %2572 = dma.done.wait [#allocation6], 1792  }
  0x6a   :  { %2573 = vsyncadd [#allocation6], 4294965504 }
  0x6b   :  { %2574 = dma.done.wait [#allocation9], 16640  }
  0x6c   :  { %2575 = vsyncadd [#allocation9], 4294950656 }
  0x6d   :  { %2576 = dma.done.wait [#allocation12], 4096  }
  0x6e   :  { %2577 = vsyncadd [#allocation12], 4294963200  ;;  %v2592_v0 = vmov 0.0   ;;  %v110_v1 = vld [vmem:[#allocation5 + $0x8] sm:$0xff]  ;;  %v109_v3 = vld [vmem:[#allocation5] sm:$0xff]  ;;  %vm159_vm0 = vcmask 195584   ;;  %v123_v50 = vlaneseq }
  0x6f   :  { %227 = vmatprep.mubr.f32.mxu0 %v2592_v0  ;;  %298 = vmatprep.mubr.f32.mxu1 %v2592_v0  ;;  %v114_v2 = vld [vmem:[#allocation5 + $0x28] sm:$0xff]  ;;  %v113_v5 = vld [vmem:[#allocation5 + $0x20] sm:$0xff]  ;;  %v112_v6 = vld [vmem:[#allocation5 + $0x18] sm:$0xff]  ;;  %s2594_s25 = smov [#allocation13]  }
  0x70   :  { %v2151_v4 = vpack.c.bf16 %v114_v2, %v110_v1  ;;  %v116_v7 = vld [vmem:[#allocation5 + $0x38] sm:$0xff]  ;;  %v2153_v8 = vpack.c.bf16 %v113_v5, %v109_v3  ;;  %v111_v10 = vld [vmem:[#allocation5 + $0x10] sm:$0xff]  ;;  %v118_v12 = vld [vmem:[#allocation5 + $0x48] sm:$0xff]  ;;  %v2714_v51 = vshrl.u32 %v123_v50, 7  ;;  %s1932_s26 = sshll.u32 %s2594_s25, 4  ;;  %s1933_s26 = int_to_ptr.vmem [resolvable:$true] %s1932_s26 }
  0x71   :  { %v2155_v9 = vpack.c.bf16 %v116_v7, %v112_v6  ;;  %v115_v11 = vld [vmem:[#allocation5 + $0x30] sm:$0xff]  ;;  %v117_v14 = vld [vmem:[#allocation5 + $0x40] sm:$0xff]  ;;  %v120_v15 = vld [vmem:[#allocation5 + $0x58] sm:$0xff]  ;;  %s2548_s27 = scalar_lea.vmem %s1933_s26, 128  ;;  %p2553_p7 = scmp.lt.s32.totalorder %s1933_s26, %s1933_s26 }
  0x72   :  { %2152 = vmatprep.subr.bf16.mxu0 %v2151_v4  ;;  %v2157_v13 = vpack.c.bf16 %v115_v11, %v111_v10  ;;  %v108_v16 = vld [vmem:[#allocation2] sm:$0xff]  ;;  %v119_v17 = vld [vmem:[#allocation5 + $0x50] sm:$0xff]  ;;  %v2717_v52 = vsub.s32 0, %v2714_v51  ;;  %v2719_v53 = vld [vmem:[#allocation7] sm:$0x77]  ;;  %v2722_v54 = vsub.s32 4, %v2714_v51  ;;  %p2549_p6 = scmp.ne.s32.totalorder %s1933_s26, %s2548_s27  ;;  %p2554_p8 = scmp.lt.s32.totalorder %s2548_s27, %s2548_s27 }
  0x73   :  { %2154 = vmatpush1.bf16.msra.mxu0 %v2153_v8  ;;  %2156 = vmatprep.subr.bf16.mxu1 %v2155_v9  ;;  %v2186_v18 = vld [vmem:[#allocation8] ss:$16 sps:$4 sm:$0xff]   ;;  %v2188_v19 = vld [vmem:[#allocation8 + $0x4] ss:$16 sps:$4 sm:$0xff]   ;;  %v2189_v20 = vld [vmem:[#allocation8 + $0x8] ss:$16 sps:$4 sm:$0xff]  }
  0x74   :  { %2158 = vmatpush1.bf16.msra.mxu1 %v2157_v13  ;;  %167 = vmatprep.subr.mxu0 %v118_v12  ;;  %v2191_v21 = vld [vmem:[#allocation8 + $0xc] ss:$16 sps:$4 sm:$0xff]   ;;  %v2194_v22 = vld [vmem:[#allocation8 + $0x24] ss:$16 sps:$4 sm:$0xff]   ;;  %v2192_v24 = vld [vmem:[#allocation8 + $0x20] ss:$16 sps:$4 sm:$0xff]   ;;  %v126_v56 = vrot.slane %v2719_v53, %v2717_v52  ;;  %v130_v57 = vrot.slane %v2719_v53, %v2722_v54  ;;  %p2555_p9 = por %p2554_p8, %p2553_p7 }
  0x75   :  { %238 = vmatprep.subr.mxu1 %v120_v15  ;;  %v2197_v23 = vld [vmem:[#allocation8 + $0x2c] ss:$16 sps:$4 sm:$0xff]   ;;  %v2195_v25 = vld [vmem:[#allocation8 + $0x28] ss:$16 sps:$4 sm:$0xff]   ;;  %v2200_v26 = vld [vmem:[#allocation8 + $0x44] ss:$16 sps:$4 sm:$0xff]  }
  0x76   :  { %v2203_v27 = vld [vmem:[#allocation8 + $0x4c] ss:$16 sps:$4 sm:$0xff]   ;;  %v2198_v28 = vld [vmem:[#allocation8 + $0x40] ss:$16 sps:$4 sm:$0xff]   ;;  %v2201_v29 = vld [vmem:[#allocation8 + $0x48] ss:$16 sps:$4 sm:$0xff]   ;;  %v146_v59 = vrot.slane %v126_v56, %v2717_v52  ;;  %v150_v60 = vrot.slane %v130_v57, %v2717_v52  ;;  %p2556_p10 = pnand %p2555_p9, %p2549_p6 }
  0x77   :  { %168 = vmatpush1.msra.mxu0 %v117_v14  ;;  %v2206_v30 = vld [vmem:[#allocation8 + $0x64] ss:$16 sps:$4 sm:$0xff]   ;;  %v2209_v31 = vld [vmem:[#allocation8 + $0x6c] ss:$16 sps:$4 sm:$0xff]   ;;  %v2204_v32 = vld [vmem:[#allocation8 + $0x60] ss:$16 sps:$4 sm:$0xff]  }
  0x78   :  { %1944 = vmatmul.mubr.msk.f32.vlgmr.msra.gmra.mrb[0].mxu0 %vm159_vm0, %v108_v16  ;;  %239 = vmatpush1.msra.mxu1 %v119_v17  ;;  %v2207_v33 = vld [vmem:[#allocation8 + $0x68] ss:$16 sps:$4 sm:$0xff]   ;;  %v2212_v34 = vld [vmem:[#allocation8 + $0x84] ss:$16 sps:$4 sm:$0xff]   ;;  %v2215_v35 = vld [vmem:[#allocation8 + $0x8c] ss:$16 sps:$4 sm:$0xff]  }
  0x79   :  { %1945 = vmatmul.mubr.msk.f32.vlgmr.msra.gmra.mrb[0].mxu1 %vm159_vm0, %v108_v16  ;;  %1264 = vmatprep.subr.bf16.mxu0 %v2188_v19  ;;  %v2210_v36 = vld [vmem:[#allocation8 + $0x80] ss:$16 sps:$4 sm:$0xff]   ;;  %v2213_v37 = vld [vmem:[#allocation8 + $0x88] ss:$16 sps:$4 sm:$0xff]   ;;  %v2218_v38 = vld [vmem:[#allocation8 + $0xa4] ss:$16 sps:$4 sm:$0xff]  }
  0x7a   :  { %1346 = vmatprep.subr.bf16.mxu1 %v2191_v21  ;;  %1265 = vmatpush1.bf16.msra.mxu0 %v2186_v18  ;;  %v2221_v39 = vld [vmem:[#allocation8 + $0xac] ss:$16 sps:$4 sm:$0xff]   ;;  %v2216_v40 = vld [vmem:[#allocation8 + $0xa0] ss:$16 sps:$4 sm:$0xff]   ;;  %v2219_v41 = vld [vmem:[#allocation8 + $0xa8] ss:$16 sps:$4 sm:$0xff]  }
  0x7b   :  { %1347 = vmatpush1.bf16.msra.mxu1 %v2189_v20  ;;  %1266 = vmatprep.subr.bf16.mxu0 %v2194_v22  ;;  %v2224_v42 = vld [vmem:[#allocation8 + $0xc4] ss:$16 sps:$4 sm:$0xff]   ;;  %v2227_v43 = vld [vmem:[#allocation8 + $0xcc] ss:$16 sps:$4 sm:$0xff]   ;;  %v2222_v44 = vld [vmem:[#allocation8 + $0xc0] ss:$16 sps:$4 sm:$0xff]  }
  0x7c   :  { %1348 = vmatprep.subr.bf16.mxu1 %v2197_v23  ;;  %v2225_v45 = vld [vmem:[#allocation8 + $0xc8] ss:$16 sps:$4 sm:$0xff]   ;;  %v2230_v46 = vld [vmem:[#allocation8 + $0xe4] ss:$16 sps:$4 sm:$0xff]   ;;  %v2233_v47 = vld [vmem:[#allocation8 + $0xec] ss:$16 sps:$4 sm:$0xff]  }
  0x7d   :  { %v2228_v48 = vld [vmem:[#allocation8 + $0xe0] ss:$16 sps:$4 sm:$0xff]   ;;  %v2231_v49 = vld [vmem:[#allocation8 + $0xe8] ss:$16 sps:$4 sm:$0xff]   ;;  %v2236_v18 = vld [vmem:[#allocation8 + $0x104] ss:$16 sps:$4 sm:$0xff]  }
  0x7e   :  { %1267 = vmatpush1.bf16.msra.mxu0 %v2192_v24  ;;  %v2724_v55 = vld [vmem:[#allocation7 + $0x8] sm:$0x77]  ;;  %v2234_v20 = vld [vmem:[#allocation8 + $0x100] ss:$16 sps:$4 sm:$0xff]   ;;  %v2242_v22 = vld [vmem:[#allocation8 + $0x124] ss:$16 sps:$4 sm:$0xff]  }
  0x7f   :  { %1349 = vmatpush1.bf16.msra.mxu1 %v2195_v25  ;;  %1268 = vmatprep.subr.bf16.mxu0 %v2200_v26  ;;  %v134_v58 = vrot.slane %v2724_v55, %v2717_v52  ;;  %v138_v62 = vrot.slane %v2724_v55, %v2722_v54  ;;  %v2239_v19 = vld [vmem:[#allocation8 + $0x10c] ss:$16 sps:$4 sm:$0xff]   ;;  %v2237_v21 = vld [vmem:[#allocation8 + $0x108] ss:$16 sps:$4 sm:$0xff]   ;;  %v2240_v24 = vld [vmem:[#allocation8 + $0x120] ss:$16 sps:$4 sm:$0xff]  }
  0x80   :  { %1350 = vmatprep.subr.bf16.mxu1 %v2203_v27  ;;  %v2245_v23 = vld [vmem:[#allocation8 + $0x12c] ss:$16 sps:$4 sm:$0xff]   ;;  %v2243_v25 = vld [vmem:[#allocation8 + $0x128] ss:$16 sps:$4 sm:$0xff]   ;;  %v2248_v26 = vld [vmem:[#allocation8 + $0x144] ss:$16 sps:$4 sm:$0xff]  }
  0x81   :  { %v154_v61 = vrot.slane %v134_v58, %v2717_v52  ;;  %v158_v5 = vrot.slane %v138_v62, %v2717_v52  ;;  %v2251_v27 = vld [vmem:[#allocation8 + $0x14c] ss:$16 sps:$4 sm:$0xff]   ;;  %v2284_v50 = vld [vmem:[#allocation8 + $0x204] ss:$16 sps:$4 sm:$0xff]  }
  0x82   :  { %1269 = vmatpush1.bf16.msra.mxu0 %v2198_v28  ;;  %v2246_v28 = vld [vmem:[#allocation8 + $0x140] ss:$16 sps:$4 sm:$0xff]   ;;  %v2287_v56 = vld [vmem:[#allocation8 + $0x20c] ss:$16 sps:$4 sm:$0xff]  }
  0x83   :  { %1351 = vmatpush1.bf16.msra.mxu1 %v2201_v29  ;;  %1270 = vmatprep.subr.bf16.mxu0 %v2206_v30  ;;  %v2249_v29 = vld [vmem:[#allocation8 + $0x148] ss:$16 sps:$4 sm:$0xff]   ;;  %v2254_v30 = vld [vmem:[#allocation8 + $0x164] ss:$16 sps:$4 sm:$0xff]  }
  0x84   :  { %1352 = vmatprep.subr.bf16.mxu1 %v2209_v31  ;;  %v2257_v31 = vld [vmem:[#allocation8 + $0x16c] ss:$16 sps:$4 sm:$0xff]  }
  0x86   :  { %1271 = vmatpush1.bf16.msra.mxu0 %v2204_v32  ;;  %v2252_v32 = vld [vmem:[#allocation8 + $0x160] ss:$16 sps:$4 sm:$0xff]  }
  0x87   :  { %1353 = vmatpush1.bf16.msra.mxu1 %v2207_v33  ;;  %1272 = vmatprep.subr.bf16.mxu0 %v2212_v34  ;;  %v2255_v33 = vld [vmem:[#allocation8 + $0x168] ss:$16 sps:$4 sm:$0xff]   ;;  %v2260_v34 = vld [vmem:[#allocation8 + $0x184] ss:$16 sps:$4 sm:$0xff]  }
  0x88   :  { %1354 = vmatprep.subr.bf16.mxu1 %v2215_v35  ;;  %v2263_v35 = vld [vmem:[#allocation8 + $0x18c] ss:$16 sps:$4 sm:$0xff]  }
  0x8a   :  { %1273 = vmatpush1.bf16.msra.mxu0 %v2210_v36  ;;  %v2258_v36 = vld [vmem:[#allocation8 + $0x180] ss:$16 sps:$4 sm:$0xff]  }
  0x8b   :  { %1355 = vmatpush1.bf16.msra.mxu1 %v2213_v37  ;;  %1274 = vmatprep.subr.bf16.mxu0 %v2218_v38  ;;  %v2261_v37 = vld [vmem:[#allocation8 + $0x188] ss:$16 sps:$4 sm:$0xff]   ;;  %v2266_v38 = vld [vmem:[#allocation8 + $0x1a4] ss:$16 sps:$4 sm:$0xff]  }
  0x8c   :  { %1356 = vmatprep.subr.bf16.mxu1 %v2221_v39  ;;  %v2269_v39 = vld [vmem:[#allocation8 + $0x1ac] ss:$16 sps:$4 sm:$0xff]  }
  0x8e   :  { %1275 = vmatpush1.bf16.msra.mxu0 %v2216_v40  ;;  %v2264_v40 = vld [vmem:[#allocation8 + $0x1a0] ss:$16 sps:$4 sm:$0xff]  }
  0x8f   :  { %1357 = vmatpush1.bf16.msra.mxu1 %v2219_v41  ;;  %1276 = vmatprep.subr.bf16.mxu0 %v2224_v42  ;;  %v2267_v41 = vld [vmem:[#allocation8 + $0x1a8] ss:$16 sps:$4 sm:$0xff]   ;;  %v2272_v42 = vld [vmem:[#allocation8 + $0x1c4] ss:$16 sps:$4 sm:$0xff]  }
  0x90   :  { %1358 = vmatprep.subr.bf16.mxu1 %v2227_v43  ;;  %v2275_v43 = vld [vmem:[#allocation8 + $0x1cc] ss:$16 sps:$4 sm:$0xff]  }
  0x92   :  { %1277 = vmatpush1.bf16.msra.mxu0 %v2222_v44  ;;  %v2270_v44 = vld [vmem:[#allocation8 + $0x1c0] ss:$16 sps:$4 sm:$0xff]  }
  0x93   :  { %1359 = vmatpush1.bf16.msra.mxu1 %v2225_v45  ;;  %1278 = vmatprep.subr.bf16.mxu0 %v2230_v46  ;;  %v2273_v45 = vld [vmem:[#allocation8 + $0x1c8] ss:$16 sps:$4 sm:$0xff]   ;;  %v2278_v46 = vld [vmem:[#allocation8 + $0x1e4] ss:$16 sps:$4 sm:$0xff]  }
  0x94   :  { %1360 = vmatprep.subr.bf16.mxu1 %v2233_v47  ;;  %v2281_v47 = vld [vmem:[#allocation8 + $0x1ec] ss:$16 sps:$4 sm:$0xff]  }
  0x96   :  { %1279 = vmatpush1.bf16.msra.mxu0 %v2228_v48  ;;  %v2276_v48 = vld [vmem:[#allocation8 + $0x1e0] ss:$16 sps:$4 sm:$0xff]  }
  0x97   :  { %1361 = vmatpush1.bf16.msra.mxu1 %v2231_v49  ;;  %1280 = vmatprep.subr.bf16.mxu0 %v2236_v18  ;;  %v2279_v49 = vld [vmem:[#allocation8 + $0x1e8] ss:$16 sps:$4 sm:$0xff]  }
  0x98   :  { %1362 = vmatprep.subr.bf16.mxu1 %v2239_v19 }
  0x9a   :  { %1281 = vmatpush1.bf16.msra.mxu0 %v2234_v20 }
  0x9b   :  { %1363 = vmatpush1.bf16.msra.mxu1 %v2237_v21  ;;  %1282 = vmatprep.subr.bf16.mxu0 %v2242_v22 }
  0x9c   :  { %1364 = vmatprep.subr.bf16.mxu1 %v2245_v23 }
  0x9e   :  { %1283 = vmatpush1.bf16.msra.mxu0 %v2240_v24 }
  0x9f   :  { %1365 = vmatpush1.bf16.msra.mxu1 %v2243_v25  ;;  %1284 = vmatprep.subr.bf16.mxu0 %v2248_v26 }
  0xa0   :  { %1366 = vmatprep.subr.bf16.mxu1 %v2251_v27 }
  0xa2   :  { %1285 = vmatpush1.bf16.msra.mxu0 %v2246_v28 }
  0xa3   :  { %1367 = vmatpush1.bf16.msra.mxu1 %v2249_v29  ;;  %1286 = vmatprep.subr.bf16.mxu0 %v2254_v30 }
  0xa4   :  { %1368 = vmatprep.subr.bf16.mxu1 %v2257_v31 }
  0xa6   :  { %1287 = vmatpush1.bf16.msra.mxu0 %v2252_v32 }
  0xa7   :  { %1369 = vmatpush1.bf16.msra.mxu1 %v2255_v33  ;;  %1288 = vmatprep.subr.bf16.mxu0 %v2260_v34 }
  0xa8   :  { %1370 = vmatprep.subr.bf16.mxu1 %v2263_v35 }
  0xaa   :  { %1289 = vmatpush1.bf16.msra.mxu0 %v2258_v36 }
  0xab   :  { %1371 = vmatpush1.bf16.msra.mxu1 %v2261_v37  ;;  %1290 = vmatprep.subr.bf16.mxu0 %v2266_v38 }
  0xac   :  { %1372 = vmatprep.subr.bf16.mxu1 %v2269_v39 }
  0xae   :  { %1291 = vmatpush1.bf16.msra.mxu0 %v2264_v40 }
  0xaf   :  { %1373 = vmatpush1.bf16.msra.mxu1 %v2267_v41  ;;  %1292 = vmatprep.subr.bf16.mxu0 %v2272_v42 }
  0xb0   :  { %1374 = vmatprep.subr.bf16.mxu1 %v2275_v43 }
  0xb2   :  { %1293 = vmatpush1.bf16.msra.mxu0 %v2270_v44 }
  0xb3   :  { %1375 = vmatpush1.bf16.msra.mxu1 %v2273_v45  ;;  %1294 = vmatprep.subr.bf16.mxu0 %v2278_v46 }
  0xb4   :  { %1376 = vmatprep.subr.bf16.mxu1 %v2281_v47 }
  0xb6   :  { %1295 = vmatpush1.bf16.msra.mxu0 %v2276_v48  ;;  %v2593_v48 = vmov 0  }
  0xb7   :  { %1377 = vmatpush1.bf16.msra.mxu1 %v2279_v49  ;;  %1305 = vmatprep.subr.bf16.mxu0 %v2284_v50  ;;  %v2282_v50 = vld [vmem:[#allocation8 + $0x200] ss:$16 sps:$4 sm:$0xff]  }
  0xb8   :  { %1387 = vmatprep.subr.bf16.mxu1 %v2287_v56  ;;  %v2285_v56 = vld [vmem:[#allocation8 + $0x208] ss:$16 sps:$4 sm:$0xff]  }
 0x14b   :  { %v229_v63 = vpop.f32.mrb[0].mxu0 }
 0x14c   :  { %v2737_v0 = vadd.f32 %v229_v63, %v146_v59  ;;  %v231_v1 = vpop.f32.mrb[1].mxu0  ;;  %v300_v2 = vpop.f32.mrb[0].mxu1  ;;  %v2759_v59 = vsub.s32 1, %v2714_v51 }
 0x14d   :  { %v2739_v3 = vadd.f32 %v231_v1, %v150_v60  ;;  %v2741_v4 = vadd.f32 %v300_v2, %v154_v61  ;;  %v302_v6 = vpop.f32.mrb[1].mxu1  ;;  %v2762_v60 = vsub.s32 5, %v2714_v51 }
 0x14e   :  { %v358_v7 = vmul.f32 %v2737_v0, %v2737_v0  ;;  %v2752_v11 = vadd.f32 %v302_v6, %v158_v5  ;;  %v308_v5 = vrot.slane %v2719_v53, %v2759_v59 }
 0x14f   :  { %v359_v8 = vmul.f32 %v2739_v3, %v2739_v3  ;;  %v360_v9 = vmul.f32 %v2741_v4, %v2741_v4  ;;  %v353_v10 = vadd.f32 %v2739_v3, %v2737_v0  ;;  %v312_v2 = vrot.slane %v2719_v53, %v2762_v60 }
 0x150   :  { %v361_v16 = vmul.f32 %v2752_v11, %v2752_v11  ;;  %v320_v6 = vrot.slane %v2724_v55, %v2762_v60 }
 0x151   :  { %v354_v12 = vadd.f32 %v353_v10, %v2741_v4  ;;  %v362_v13 = vadd.f32 %v359_v8, %v358_v7  ;;  %v2771_v8 = vsub.s32 6, %v2714_v51 }
 0x153   :  { %v355_v14 = vadd.f32 %v354_v12, %v2752_v11  ;;  %v363_v15 = vadd.f32 %v362_v13, %v360_v9  ;;  %v2774_v9 = vsub.s32 2, %v2714_v51  ;;  %v326_v12 = vpack.c.bf16 %v312_v2, %v312_v2  ;;  %v2296_v2 = vld [vmem:[#allocation8 + $0x244] ss:$16 sps:$4 sm:$0xff]  }
 0x154   :  { %v325_v13 = vpack.c.bf16 %v308_v5, %v308_v5  ;;  %v344_v19 = vrot.slane %v2724_v55, %v2771_v8  ;;  %v2299_v5 = vld [vmem:[#allocation8 + $0x24c] ss:$16 sps:$4 sm:$0xff]  }
 0x155   :  { %356 = vadd.xlane.f32.xlu0 %v355_v14  ;;  %v364_v17 = vadd.f32 %v363_v15, %v361_v16  ;;  %v328_v14 = vpack.c.bf16 %v320_v6, %v320_v6  ;;  %v336_v15 = vrot.slane %v2719_v53, %v2771_v8  ;;  %v332_v16 = vrot.slane %v2719_v53, %v2774_v9  ;;  %v2294_v6 = vld [vmem:[#allocation8 + $0x240] ss:$16 sps:$4 sm:$0xff]  }
 0x156   :  { %v387_v18 = vshrl.u32 %v325_v13, 16  ;;  %v352_v24 = vpack.c.bf16 %v344_v19, %v344_v19  ;;  %v2300_v13 = vld [vmem:[#allocation8 + $0x260] ss:$16 sps:$4 sm:$0xff]   ;;  %v2314_v19 = vld [vmem:[#allocation8 + $0x2a4] ss:$16 sps:$4 sm:$0xff]  }
 0x157   :  { %v411_v20 = vshrl.u32 %v328_v14, 16  ;;  %v350_v21 = vpack.c.bf16 %v336_v15, %v336_v15  ;;  %v349_v51 = vpack.c.bf16 %v332_v16, %v332_v16  ;;  %v2303_v14 = vld [vmem:[#allocation8 + $0x268] ss:$16 sps:$4 sm:$0xff]   ;;  %v2308_v15 = vld [vmem:[#allocation8 + $0x284] ss:$16 sps:$4 sm:$0xff]  }
 0x158   :  { %v388_v23 = vpack.i.b16 %v387_v18, %v387_v18  ;;  %v444_v35 = vpack.i.b16 %v352_v24, %v352_v24  ;;  %v2311_v16 = vld [vmem:[#allocation8 + $0x28c] ss:$16 sps:$4 sm:$0xff]   ;;  %v2309_v18 = vld [vmem:[#allocation8 + $0x288] ss:$16 sps:$4 sm:$0xff]   ;;  %v2318_v24 = vld [vmem:[#allocation8 + $0x2c0] ss:$16 sps:$4 sm:$0xff]  }
 0x159   :  { %365 = vadd.xlane.f32.xlu0 %v364_v17  ;;  %v395_v17 = vshrl.u32 %v326_v12, 16  ;;  %v412_v25 = vpack.i.b16 %v411_v20, %v411_v20  ;;  %v430_v26 = vpack.i.b16 %v350_v21, %v350_v21  ;;  %v423_v27 = vpack.i.b16 %v349_v51, %v349_v51  ;;  %v2305_v12 = vld [vmem:[#allocation8 + $0x26c] ss:$16 sps:$4 sm:$0xff]   ;;  %v2312_v21 = vld [vmem:[#allocation8 + $0x2a0] ss:$16 sps:$4 sm:$0xff]  }
 0x15a   :  { %v393_v33 = vrot.slane %v388_v23, %v2717_v52  ;;  %v449_v41 = vrot.slane %v444_v35, %v2759_v59  ;;  %v2317_v20 = vld [vmem:[#allocation8 + $0x2ac] ss:$16 sps:$4 sm:$0xff]   ;;  %v2315_v51 = vld [vmem:[#allocation8 + $0x2a8] ss:$16 sps:$4 sm:$0xff]   ;;  %v2336_v35 = vld [vmem:[#allocation8 + $0x320] ss:$16 sps:$4 sm:$0xff]  }
 0x15b   :  { %v396_v22 = vpack.i.b16 %v395_v17, %v395_v17  ;;  %v417_v34 = vrot.slane %v412_v25, %v2717_v52  ;;  %v2306_v17 = vld [vmem:[#allocation8 + $0x280] ss:$16 sps:$4 sm:$0xff]   ;;  %v2323_v23 = vld [vmem:[#allocation8 + $0x2cc] ss:$16 sps:$4 sm:$0xff]   ;;  %v2321_v25 = vld [vmem:[#allocation8 + $0x2c8] ss:$16 sps:$4 sm:$0xff]  }
 0x15d   :  { %v401_v32 = vrot.slane %v396_v22, %v2717_v52  ;;  %v2320_v22 = vld [vmem:[#allocation8 + $0x2c4] ss:$16 sps:$4 sm:$0xff]  }
 0x1e2   :  { %v357_v57 = vpop.xlane.xlu0 %356 }
 0x1e3   :  { %v367_v58 = vmul.f32 0.001953125, %v357_v57 }
 0x1e5   :  { %v369_v62 = vmul.f32 %v367_v58, %v367_v58  ;;  %v372_v28 = vsub.f32 %v2737_v0, %v367_v58  ;;  %v374_v29 = vsub.f32 %v2741_v4, %v367_v58  ;;  %v373_v53 = vsub.f32 %v2739_v3, %v367_v58 }
 0x1e6   :  { %v366_v61 = vpop.xlane.xlu0 %365  ;;  %v375_v30 = vsub.f32 %v2752_v11, %v367_v58  ;;  %v435_v0 = vrot.slane %v430_v26, %v2759_v59  ;;  %v428_v3 = vrot.slane %v423_v27, %v2759_v59  ;;  %v2290_v58 = vld [vmem:[#allocation8 + $0x224] ss:$16 sps:$4 sm:$0xff]   ;;  %v2329_v27 = vld [vmem:[#allocation8 + $0x2ec] ss:$16 sps:$4 sm:$0xff]  }
 0x1e7   :  { %v368_v63 = vmul.f32 0.001953125, %v366_v61  ;;  %v2293_v61 = vld [vmem:[#allocation8 + $0x22c] ss:$16 sps:$4 sm:$0xff]   ;;  %v2326_v26 = vld [vmem:[#allocation8 + $0x2e4] ss:$16 sps:$4 sm:$0xff]  }
 0x1e9   :  { %v370_v1 = vsub.f32 %v368_v63, %v369_v62  ;;  %v2288_v63 = vld [vmem:[#allocation8 + $0x220] ss:$16 sps:$4 sm:$0xff]  }
 0x1eb   :  { %v371_v7 = vmax.f32 %v370_v1, 0.0  ;;  %v2291_v1 = vld [vmem:[#allocation8 + $0x228] ss:$16 sps:$4 sm:$0xff]  }
 0x1ed   :  { %v376_v10 = vadd.f32 1e-05, %v371_v7  ;;  %v2297_v7 = vld [vmem:[#allocation8 + $0x248] ss:$16 sps:$4 sm:$0xff]  }
 0x1ef   :  { %2410 = vrsqrt.f32 %v376_v10  ;;  %v2302_v10 = vld [vmem:[#allocation8 + $0x264] ss:$16 sps:$4 sm:$0xff]  }
 0x1f9   :  { %v2411_v31 = vpop.eup %2410 }
 0x1fa   :  { %v379_v36 = vmul.f32 %v2411_v31, %v373_v53  ;;  %v378_v37 = vmul.f32 %v2411_v31, %v372_v28  ;;  %v381_v38 = vmul.f32 %v2411_v31, %v375_v30  ;;  %v2789_v39 = vmul.f32 %v2411_v31, %v374_v29  ;;  %v2324_v28 = vld [vmem:[#allocation8 + $0x2e0] ss:$16 sps:$4 sm:$0xff]   ;;  %v2327_v29 = vld [vmem:[#allocation8 + $0x2e8] ss:$16 sps:$4 sm:$0xff]   ;;  %v2332_v53 = vld [vmem:[#allocation8 + $0x304] ss:$16 sps:$4 sm:$0xff]  }
 0x1fb   :  { %v2335_v30 = vld [vmem:[#allocation8 + $0x30c] ss:$16 sps:$4 sm:$0xff]   ;;  %v2330_v31 = vld [vmem:[#allocation8 + $0x300] ss:$16 sps:$4 sm:$0xff]  }
 0x1fc   :  { %v383_v4 = vpack.c.bf16 %v379_v36, %v379_v36  ;;  %v382_v40 = vpack.c.bf16 %v378_v37, %v378_v37  ;;  %v385_v11 = vpack.c.bf16 %v381_v38, %v381_v38  ;;  %v2339_v36 = vld [vmem:[#allocation8 + $0x328] ss:$16 sps:$4 sm:$0xff]   ;;  %v2344_v37 = vld [vmem:[#allocation8 + $0x344] ss:$16 sps:$4 sm:$0xff]   ;;  %v2347_v38 = vld [vmem:[#allocation8 + $0x34c] ss:$16 sps:$4 sm:$0xff]  }
 0x1fe   :  { %v419_v42 = vmul.bf16 %v401_v32, %v383_v4  ;;  %v418_v43 = vmul.bf16 %v393_v33, %v382_v40  ;;  %v421_v44 = vmul.bf16 %v417_v34, %v385_v11  ;;  %v2333_v32 = vld [vmem:[#allocation8 + $0x308] ss:$16 sps:$4 sm:$0xff]   ;;  %v2338_v33 = vld [vmem:[#allocation8 + $0x324] ss:$16 sps:$4 sm:$0xff]   ;;  %v2341_v34 = vld [vmem:[#allocation8 + $0x32c] ss:$16 sps:$4 sm:$0xff]  }
 0x1ff   :  { %v2342_v4 = vld [vmem:[#allocation8 + $0x340] ss:$16 sps:$4 sm:$0xff]   ;;  %v2345_v40 = vld [vmem:[#allocation8 + $0x348] ss:$16 sps:$4 sm:$0xff]   ;;  %v2353_v11 = vld [vmem:[#allocation8 + $0x36c] ss:$16 sps:$4 sm:$0xff]  }
 0x200   :  { %v451_v45 = vadd.bf16 %v435_v0, %v419_v42  ;;  %v450_v46 = vadd.bf16 %v428_v3, %v418_v43  ;;  %v453_v47 = vadd.bf16 %v449_v41, %v421_v44  ;;  %v316_v0 = vrot.slane %v2724_v55, %v2759_v59  ;;  %v2350_v3 = vld [vmem:[#allocation8 + $0x364] ss:$16 sps:$4 sm:$0xff]   ;;  %v2348_v42 = vld [vmem:[#allocation8 + $0x360] ss:$16 sps:$4 sm:$0xff]   ;;  %v2351_v43 = vld [vmem:[#allocation8 + $0x368] ss:$16 sps:$4 sm:$0xff]  }
 0x201   :  { %v2356_v44 = vld [vmem:[#allocation8 + $0x384] ss:$16 sps:$4 sm:$0xff]  }
 0x202   :  { %v455_v49 = vmax.bf16 %v2593_v48, %v451_v45  ;;  %v454_v57 = vmax.bf16 %v2593_v48, %v450_v46  ;;  %v457_v62 = vmax.bf16 %v2593_v48, %v453_v47  ;;  %v327_v41 = vpack.c.bf16 %v316_v0, %v316_v0  ;;  %v2359_v45 = vld [vmem:[#allocation8 + $0x38c] ss:$16 sps:$4 sm:$0xff]  }
 0x203   :  { %v340_v46 = vrot.slane %v2724_v55, %v2774_v9  ;;  %v384_v55 = vpack.c.bf16 %v2789_v39, %v2789_v39 }
 0x204   :  { %1296 = vmatprep.mubr.bf16.mxu0 %v455_v49  ;;  %1378 = vmatprep.mubr.bf16.mxu1 %v455_v49  ;;  %v403_v47 = vshrl.u32 %v327_v41, 16  ;;  %v2354_v49 = vld [vmem:[#allocation8 + $0x380] ss:$16 sps:$4 sm:$0xff]  }
 0x205   :  { %1297 = vmatmul.mubr.bf16.vlgmr.msra.gmra.mrb[4].mxu0 %v454_v57  ;;  %1379 = vmatmul.mubr.bf16.vlgmr.msra.gmra.mrb[4].mxu1 %v454_v57  ;;  %v2365_v57 = vld [vmem:[#allocation8 + $0x3ac] ss:$16 sps:$4 sm:$0xff]  }
 0x206   :  { %1306 = vmatpush1.bf16.msra.mxu0 %v2282_v50  ;;  %1388 = vmatpush1.bf16.msra.mxu1 %v2285_v56  ;;  %v2357_v50 = vld [vmem:[#allocation8 + $0x388] ss:$16 sps:$4 sm:$0xff]   ;;  %v2362_v56 = vld [vmem:[#allocation8 + $0x3a4] ss:$16 sps:$4 sm:$0xff]  }
 0x207   :  { %1337 = vmatprep.mubr.bf16.mxu0 %v457_v62  ;;  %1419 = vmatprep.mubr.bf16.mxu1 %v457_v62  ;;  %v2360_v62 = vld [vmem:[#allocation8 + $0x3a0] ss:$16 sps:$4 sm:$0xff]  }
 0x208   :  { %1307 = vmatprep.subr.bf16.mxu0 %v2290_v58  ;;  %1389 = vmatprep.subr.bf16.mxu1 %v2293_v61  ;;  %v351_v58 = vpack.c.bf16 %v340_v46, %v340_v46  ;;  %v404_v61 = vpack.i.b16 %v403_v47, %v403_v47  ;;  %v2379_v46 = vld [vmem:[#allocation11 + $0xc0] sm:$0xff]  }
 0x209   :  { %v2380_v47 = vld [vmem:[#allocation11] sm:$0xff]  }
 0x20a   :  { %1308 = vmatpush1.bf16.msra.mxu0 %v2288_v63  ;;  %1390 = vmatpush1.bf16.msra.mxu1 %v2291_v1  ;;  %v2363_v63 = vld [vmem:[#allocation8 + $0x3a8] ss:$16 sps:$4 sm:$0xff]   ;;  %v2368_v1 = vld [vmem:[#allocation8 + $0x3c4] ss:$16 sps:$4 sm:$0xff]  }
 0x20b   :  { %1309 = vmatprep.subr.bf16.mxu0 %v2296_v2  ;;  %1391 = vmatprep.subr.bf16.mxu1 %v2299_v5  ;;  %v2371_v2 = vld [vmem:[#allocation8 + $0x3cc] ss:$16 sps:$4 sm:$0xff]   ;;  %v409_v5 = vrot.slane %v404_v61, %v2717_v52  ;;  %v2386_v61 = vld [vmem:[#allocation11 + $0x50] sm:$0xff]  }
 0x20e   :  { %1310 = vmatpush1.bf16.msra.mxu0 %v2294_v6  ;;  %1392 = vmatpush1.bf16.msra.mxu1 %v2297_v7  ;;  %v437_v6 = vpack.i.b16 %v351_v58, %v351_v58  ;;  %v2366_v7 = vld [vmem:[#allocation8 + $0x3c0] ss:$16 sps:$4 sm:$0xff]   ;;  %v2385_v58 = vld [vmem:[#allocation11 + $0x88] sm:$0xff]  }
 0x20f   :  { %1311 = vmatprep.subr.bf16.mxu0 %v2302_v10  ;;  %1393 = vmatprep.subr.bf16.mxu1 %v2305_v12  ;;  %v2369_v10 = vld [vmem:[#allocation8 + $0x3c8] ss:$16 sps:$4 sm:$0xff]   ;;  %v2374_v12 = vld [vmem:[#allocation8 + $0x3e4] ss:$16 sps:$4 sm:$0xff]  }
 0x212   :  { %1312 = vmatpush1.bf16.msra.mxu0 %v2300_v13  ;;  %1394 = vmatpush1.bf16.msra.mxu1 %v2303_v14  ;;  %v2377_v13 = vld [vmem:[#allocation8 + $0x3ec] ss:$16 sps:$4 sm:$0xff]   ;;  %v420_v14 = vmul.bf16 %v409_v5, %v384_v55 }
 0x213   :  { %1313 = vmatprep.subr.bf16.mxu0 %v2308_v15  ;;  %1395 = vmatprep.subr.bf16.mxu1 %v2311_v16  ;;  %v442_v15 = vrot.slane %v437_v6, %v2759_v59  ;;  %v2372_v16 = vld [vmem:[#allocation8 + $0x3e0] ss:$16 sps:$4 sm:$0xff]   ;;  %v2391_v55 = vld [vmem:[#allocation11 + $0xd8] sm:$0xff]  }
 0x214   :  { %v2392_v5 = vld [vmem:[#allocation11 + $0x18] sm:$0xff]  }
 0x215   :  { %v452_v39 = vadd.bf16 %v442_v15, %v420_v14  ;;  %v2393_v6 = vld [vmem:[#allocation11 + $0x98] sm:$0xff]   ;;  %v2398_v14 = vld [vmem:[#allocation11 + $0x68] sm:$0xff]  }
 0x216   :  { %1314 = vmatpush1.bf16.msra.mxu0 %v2306_v17  ;;  %1396 = vmatpush1.bf16.msra.mxu1 %v2309_v18  ;;  %v2375_v17 = vld [vmem:[#allocation8 + $0x3e8] ss:$16 sps:$4 sm:$0xff]  }
 0x217   :  { %1315 = vmatprep.subr.bf16.mxu0 %v2314_v19  ;;  %1397 = vmatprep.subr.bf16.mxu1 %v2317_v20  ;;  %v456_v18 = vmax.bf16 %v2593_v48, %v452_v39  ;;  %v2806_v19 = vld [vmem:[#allocation10] sm:$0x77]  ;;  %v2808_v20 = vld [vmem:[#allocation10 + $0x8] sm:$0x77]  ;;  %v2399_v15 = vld [vmem:[#allocation11 + $0xe8] sm:$0xff]  }
 0x218   :  { %v2402_v39 = vld [vmem:[#allocation11 + $0x70] sm:$0xff]  }
 0x21a   :  { %1316 = vmatpush1.bf16.msra.mxu0 %v2312_v21  ;;  %1398 = vmatpush1.bf16.msra.mxu1 %v2315_v51  ;;  %v591_v21 = vrot.slane %v2806_v19, %v2717_v52  ;;  %v599_v51 = vrot.slane %v2808_v20, %v2717_v52 }
 0x21b   :  { %1317 = vmatprep.subr.bf16.mxu0 %v2320_v22  ;;  %1399 = vmatprep.subr.bf16.mxu1 %v2323_v23  ;;  %v595_v22 = vrot.slane %v2806_v19, %v2722_v54 }
 0x21c   :  { %v611_v23 = vrot.slane %v591_v21, %v2717_v52  ;;  %v2404_v21 = vld [vmem:[#allocation11 + $0x30] sm:$0xff]  }
 0x21e   :  { %1318 = vmatpush1.bf16.msra.mxu0 %v2318_v24  ;;  %1400 = vmatpush1.bf16.msra.mxu1 %v2321_v25  ;;  %v619_v24 = vrot.slane %v599_v51, %v2717_v52  ;;  %v615_v25 = vrot.slane %v595_v22, %v2717_v52  ;;  %v2405_v51 = vld [vmem:[#allocation11 + $0xb0] sm:$0xff]   ;;  %v2406_v22 = vld [vmem:[#allocation11 + $0x78] sm:$0xff]  }
 0x21f   :  { %1319 = vmatprep.subr.bf16.mxu0 %v2326_v26  ;;  %1401 = vmatprep.subr.bf16.mxu1 %v2329_v27  ;;  %v603_v26 = vrot.slane %v2808_v20, %v2722_v54 }
 0x222   :  { %1320 = vmatpush1.bf16.msra.mxu0 %v2324_v28  ;;  %1402 = vmatpush1.bf16.msra.mxu1 %v2327_v29 }
 0x223   :  { %1321 = vmatprep.subr.bf16.mxu0 %v2332_v53  ;;  %1403 = vmatprep.subr.bf16.mxu1 %v2335_v30 }
 0x226   :  { %1322 = vmatpush1.bf16.msra.mxu0 %v2330_v31  ;;  %1404 = vmatpush1.bf16.msra.mxu1 %v2333_v32 }
 0x227   :  { %1323 = vmatprep.subr.bf16.mxu0 %v2338_v33  ;;  %1405 = vmatprep.subr.bf16.mxu1 %v2341_v34  ;;  %v623_v33 = vrot.slane %v603_v26, %v2717_v52 }
 0x22a   :  { %1324 = vmatpush1.bf16.msra.mxu0 %v2336_v35  ;;  %1406 = vmatpush1.bf16.msra.mxu1 %v2339_v36 }
 0x22b   :  { %1325 = vmatprep.subr.bf16.mxu0 %v2344_v37  ;;  %1407 = vmatprep.subr.bf16.mxu1 %v2347_v38 }
 0x22e   :  { %1326 = vmatpush1.bf16.msra.mxu0 %v2342_v4  ;;  %1408 = vmatpush1.bf16.msra.mxu1 %v2345_v40 }
 0x22f   :  { %1327 = vmatprep.subr.bf16.mxu0 %v2350_v3  ;;  %1409 = vmatprep.subr.bf16.mxu1 %v2353_v11 }
 0x232   :  { %1328 = vmatpush1.bf16.msra.mxu0 %v2348_v42  ;;  %1410 = vmatpush1.bf16.msra.mxu1 %v2351_v43 }
 0x233   :  { %1329 = vmatprep.subr.bf16.mxu0 %v2356_v44  ;;  %1411 = vmatprep.subr.bf16.mxu1 %v2359_v45  ;;  %v2378_v45 = vld [vmem:[#allocation11 + $0x40] sm:$0xff]  }
 0x236   :  { %1330 = vmatpush1.bf16.msra.mxu0 %v2354_v49  ;;  %1412 = vmatpush1.bf16.msra.mxu1 %v2357_v50  ;;  %v2381_v49 = vld [vmem:[#allocation11 + $0x80] sm:$0xff]   ;;  %v2382_v50 = vld [vmem:[#allocation11 + $0x48] sm:$0xff]  }
 0x237   :  { %1331 = vmatprep.subr.bf16.mxu0 %v2362_v56  ;;  %1413 = vmatprep.subr.bf16.mxu1 %v2365_v57  ;;  %v2383_v56 = vld [vmem:[#allocation11 + $0xc8] sm:$0xff]  }
 0x238   :  { %v2384_v57 = vld [vmem:[#allocation11 + $0x8] sm:$0xff]  }
 0x23a   :  { %1332 = vmatpush1.bf16.msra.mxu0 %v2360_v62  ;;  %1414 = vmatpush1.bf16.msra.mxu1 %v2363_v63  ;;  %v2387_v62 = vld [vmem:[#allocation11 + $0xd0] sm:$0xff]  }
 0x23b   :  { %1333 = vmatprep.subr.bf16.mxu0 %v2368_v1  ;;  %1415 = vmatprep.subr.bf16.mxu1 %v2371_v2  ;;  %v2388_v63 = vld [vmem:[#allocation11 + $0x10] sm:$0xff]   ;;  %v2390_v2 = vld [vmem:[#allocation11 + $0x58] sm:$0xff]  }
 0x23c   :  { %v2389_v1 = vld [vmem:[#allocation11 + $0x90] sm:$0xff]  }
 0x23e   :  { %1334 = vmatpush1.bf16.msra.mxu0 %v2366_v7  ;;  %1416 = vmatpush1.bf16.msra.mxu1 %v2369_v10  ;;  %v2394_v7 = vld [vmem:[#allocation11 + $0x60] sm:$0xff]  }
 0x23f   :  { %1335 = vmatprep.subr.bf16.mxu0 %v2374_v12  ;;  %1417 = vmatprep.subr.bf16.mxu1 %v2377_v13  ;;  %v2395_v10 = vld [vmem:[#allocation11 + $0xe0] sm:$0xff]  }
 0x240   :  { %v2396_v12 = vld [vmem:[#allocation11 + $0x20] sm:$0xff]  }
 0x241   :  { %v2397_v13 = vld [vmem:[#allocation11 + $0xa0] sm:$0xff]  }
 0x242   :  { %1336 = vmatpush1.bf16.msra.mxu0 %v2372_v16  ;;  %1418 = vmatpush1.bf16.msra.mxu1 %v2375_v17  ;;  %v2400_v16 = vld [vmem:[#allocation11 + $0x28] sm:$0xff]  }
 0x243   :  { %2107 = vmatprep.subr.bf16.mxu0 %v2378_v45  ;;  %2129 = vmatprep.subr.bf16.mxu1 %v2379_v46  ;;  %v2401_v17 = vld [vmem:[#allocation11 + $0xa8] sm:$0xff]  }
 0x245   :  { %1338 = vmatmul.mubr.bf16.vlgmr.msra.gmra.mrb[4].mxu0 %v456_v18  ;;  %1420 = vmatmul.mubr.bf16.vlgmr.msra.gmra.mrb[4].mxu1 %v456_v18  ;;  %v2403_v18 = vld [vmem:[#allocation11 + $0xf0] sm:$0xff]  }
 0x246   :  { %2108 = vmatpush3.bf16.msra.mxu0 %v2380_v47  ;;  %2130 = vmatpush3.bf16.msra.mxu1 %v2381_v49 }
 0x247   :  { %2109 = vmatprep.subr.bf16.mxu0 %v2382_v50  ;;  %2131 = vmatprep.subr.bf16.mxu1 %v2383_v56 }
 0x24a   :  { %2110 = vmatpush3.bf16.msra.mxu0 %v2384_v57  ;;  %2132 = vmatpush3.bf16.msra.mxu1 %v2385_v58 }
 0x24b   :  { %2111 = vmatprep.subr.bf16.mxu0 %v2386_v61  ;;  %2133 = vmatprep.subr.bf16.mxu1 %v2387_v62 }
 0x24e   :  { %2112 = vmatpush3.bf16.msra.mxu0 %v2388_v63  ;;  %2134 = vmatpush3.bf16.msra.mxu1 %v2389_v1 }
 0x24f   :  { %2113 = vmatprep.subr.bf16.mxu0 %v2390_v2  ;;  %2135 = vmatprep.subr.bf16.mxu1 %v2391_v55 }
 0x252   :  { %2114 = vmatpush3.bf16.msra.mxu0 %v2392_v5  ;;  %2136 = vmatpush3.bf16.msra.mxu1 %v2393_v6 }
 0x253   :  { %2115 = vmatprep.subr.bf16.mxu0 %v2394_v7  ;;  %2137 = vmatprep.subr.bf16.mxu1 %v2395_v10 }
 0x256   :  { %2116 = vmatpush3.bf16.msra.mxu0 %v2396_v12  ;;  %2138 = vmatpush3.bf16.msra.mxu1 %v2397_v13 }
 0x257   :  { %2117 = vmatprep.subr.bf16.mxu0 %v2398_v14  ;;  %2139 = vmatprep.subr.bf16.mxu1 %v2399_v15 }
 0x25a   :  { %2118 = vmatpush3.bf16.msra.mxu0 %v2400_v16  ;;  %2140 = vmatpush3.bf16.msra.mxu1 %v2401_v17 }
 0x25b   :  { %2119 = vmatprep.subr.bf16.mxu0 %v2402_v39  ;;  %2141 = vmatprep.subr.bf16.mxu1 %v2403_v18 }
 0x25e   :  { %2120 = vmatpush3.bf16.msra.mxu0 %v2404_v21  ;;  %2142 = vmatpush3.bf16.msra.mxu1 %v2405_v51 }
 0x25f   :  { %2121 = vmatprep.subr.bf16.mxu0 %v2406_v22 }
 0x318   :  { %v1339_v27 = vpop.f32.mrb[4].mxu0  ;;  %v1421_v28 = vpop.f32.mrb[4].mxu1 }
 0x319   :  { %v2821_v29 = vadd.f32 %v1339_v27, %v611_v23  ;;  %v1341_v53 = vpop.f32.mrb[5].mxu0  ;;  %v1423_v30 = vpop.f32.mrb[5].mxu1  ;;  %v2823_v31 = vadd.f32 %v1421_v28, %v619_v24  ;;  %v2407_v23 = vld [vmem:[#allocation11 + $0xf8] sm:$0xff]  }
 0x31a   :  { %v2825_v32 = vadd.f32 %v1341_v53, %v615_v25  ;;  %v1343_v34 = vpop.f32.mrb[6].mxu0  ;;  %v1425_v35 = vpop.f32.mrb[6].mxu1  ;;  %v2836_v40 = vadd.f32 %v1423_v30, %v623_v33  ;;  %v2408_v24 = vld [vmem:[#allocation11 + $0x38] sm:$0xff]   ;;  %2143 = vmatprep.subr.bf16.mxu1 %v2407_v23  ;;  %v1435_v33 = vrot.slane %v2806_v19, %v2762_v60 }
 0x31b   :  { %v1481_v36 = vmul.f32 %v2821_v29, %v2821_v29  ;;  %v1344_v37 = vpop.f32.mrb[7].mxu0  ;;  %v1426_v38 = vpop.f32.mrb[7].mxu1  ;;  %v1483_v4 = vmul.f32 %v2823_v31, %v2823_v31  ;;  %v2409_v25 = vld [vmem:[#allocation11 + $0xb8] sm:$0xff]   ;;  %2122 = vmatpush3.bf16.msra.mxu0 %v2408_v24  ;;  %v1443_v35 = vrot.slane %v2808_v20, %v2762_v60  ;;  %v1455_v60 = vrot.slane %v2806_v19, %v2774_v9 }
 0x31c   :  { %v1482_v54 = vmul.f32 %v2825_v32, %v2825_v32  ;;  %v1476_v0 = vadd.f32 %v2825_v32, %v2821_v29  ;;  %v1484_v43 = vmul.f32 %v2836_v40, %v2836_v40  ;;  %2144 = vmatpush3.bf16.msra.mxu1 %v2409_v25  ;;  %v1439_v37 = vrot.slane %v2808_v20, %v2759_v59 }
 0x31d   :  { %v1472_v56 = vpack.c.bf16 %v1455_v60, %v1455_v60 }
 0x31e   :  { %v1477_v3 = vadd.f32 %v2823_v31, %v1476_v0  ;;  %v1485_v11 = vadd.f32 %v1482_v54, %v1481_v36  ;;  %v1431_v36 = vrot.slane %v2806_v19, %v2759_v59  ;;  %v1449_v54 = vpack.c.bf16 %v1435_v33, %v1435_v33 }
 0x31f   :  { %v1546_v2 = vpack.i.b16 %v1472_v56, %v1472_v56 }
 0x320   :  { %v1478_v41 = vadd.f32 %v2836_v40, %v1477_v3  ;;  %v1486_v42 = vadd.f32 %v1485_v11, %v1483_v4  ;;  %v1451_v4 = vpack.c.bf16 %v1443_v35, %v1443_v35  ;;  %v1448_v3 = vpack.c.bf16 %v1431_v36, %v1431_v36  ;;  %v2074_v36 = vld [vmem:[%s2895_s6] ss:$0 sm:$0xff] }
 0x321   :  { %v1450_v11 = vpack.c.bf16 %v1439_v37, %v1439_v37 }
 0x322   :  { %1479 = vadd.xlane.f32.xlu1 %v1478_v41  ;;  %v1487_v44 = vadd.f32 %v1486_v42, %v1484_v43  ;;  %v1459_v41 = vrot.slane %v2806_v19, %v2771_v8  ;;  %v1467_v42 = vrot.slane %v2808_v20, %v2771_v8  ;;  %v1463_v43 = vrot.slane %v2808_v20, %v2774_v9 }
 0x323   :  { %v1534_v45 = vshrl.u32 %v1451_v4, 16  ;;  %v1510_v46 = vshrl.u32 %v1448_v3, 16  ;;  %v1526_v47 = vshrl.u32 %v1450_v11, 16 }
 0x324   :  { %v1473_v49 = vpack.c.bf16 %v1459_v41, %v1459_v41  ;;  %v1475_v50 = vpack.c.bf16 %v1467_v42, %v1467_v42  ;;  %v1474_v57 = vpack.c.bf16 %v1463_v43, %v1463_v43 }
 0x325   :  { %v1535_v61 = vpack.i.b16 %v1534_v45, %v1534_v45  ;;  %v1511_v62 = vpack.i.b16 %v1510_v46, %v1510_v46  ;;  %v1527_v63 = vpack.i.b16 %v1526_v47, %v1526_v47 }
 0x326   :  { %1488 = vadd.xlane.f32.xlu1 %v1487_v44  ;;  %v1518_v44 = vshrl.u32 %v1449_v54, 16  ;;  %v1553_v1 = vpack.i.b16 %v1473_v49, %v1473_v49  ;;  %v1567_v8 = vpack.i.b16 %v1475_v50, %v1475_v50  ;;  %v1560_v55 = vpack.i.b16 %v1474_v57, %v1474_v57 }
 0x327   :  { %v1540_v10 = vrot.slane %v1535_v61, %v2717_v52  ;;  %v1516_v12 = vrot.slane %v1511_v62, %v2717_v52  ;;  %v1532_v13 = vrot.slane %v1527_v63, %v2717_v52 }
 0x328   :  { %v1519_v58 = vpack.i.b16 %v1518_v44, %v1518_v44 }
 0x32a   :  { %v1524_v7 = vrot.slane %v1519_v58, %v2717_v52 }
 0x3af   :  { %v1480_v26 = vpop.xlane.xlu1 %1479 }
 0x3b0   :  { %v1490_v27 = vmul.f32 0.001953125, %v1480_v26 }
 0x3b2   :  { %v1492_v53 = vmul.f32 %v1490_v27, %v1490_v27  ;;  %v1495_v19 = vsub.f32 %v2821_v29, %v1490_v27  ;;  %v1497_v9 = vsub.f32 %v2823_v31, %v1490_v27  ;;  %v1496_v20 = vsub.f32 %v2825_v32, %v1490_v27 }
 0x3b3   :  { %v1489_v28 = vpop.xlane.xlu1 %1488  ;;  %v1498_v5 = vsub.f32 %v2836_v40, %v1490_v27  ;;  %v1558_v29 = vrot.slane %v1553_v1, %v2759_v59  ;;  %v1572_v31 = vrot.slane %v1567_v8, %v2759_v59  ;;  %v1551_v32 = vrot.slane %v1546_v2, %v2759_v59 }
 0x3b4   :  { %v1491_v30 = vmul.f32 0.001953125, %v1489_v28  ;;  %v1565_v40 = vrot.slane %v1560_v55, %v2759_v59 }
 0x3b6   :  { %v1493_v34 = vsub.f32 %v1491_v30, %v1492_v53 }
 0x3b8   :  { %v1494_v38 = vmax.f32 %v1493_v34, 0.0 }
 0x3ba   :  { %v1499_v0 = vadd.f32 1e-05, %v1494_v38 }
 0x3bc   :  { %2412 = vrsqrt.f32 %v1499_v0 }
 0x3c6   :  { %v2413_v6 = vpop.eup %2412 }
 0x3c7   :  { %v1502_v14 = vmul.f32 %v2413_v6, %v1496_v20  ;;  %v1504_v15 = vmul.f32 %v2413_v6, %v1498_v5  ;;  %v1501_v16 = vmul.f32 %v2413_v6, %v1495_v19  ;;  %v1503_v17 = vmul.f32 %v2413_v6, %v1497_v9 }
 0x3c9   :  { %v1506_v39 = vpack.c.bf16 %v1502_v14, %v1502_v14  ;;  %v1508_v18 = vpack.c.bf16 %v1504_v15, %v1504_v15  ;;  %v1505_v21 = vpack.c.bf16 %v1501_v16, %v1501_v16  ;;  %v1507_v51 = vpack.c.bf16 %v1503_v17, %v1503_v17 }
 0x3cb   :  { %v1542_v22 = vmul.bf16 %v1524_v7, %v1506_v39  ;;  %v1544_v23 = vmul.bf16 %v1540_v10, %v1508_v18  ;;  %v1541_v24 = vmul.bf16 %v1516_v12, %v1505_v21  ;;  %v1543_v52 = vmul.bf16 %v1532_v13, %v1507_v51 }
 0x3cd   :  { %v1574_v25 = vadd.bf16 %v1558_v29, %v1542_v22  ;;  %v1576_v26 = vadd.bf16 %v1572_v31, %v1544_v23  ;;  %v1573_v27 = vadd.bf16 %v1551_v32, %v1541_v24  ;;  %v1575_v28 = vadd.bf16 %v1565_v40, %v1543_v52 }
 0x3cf   :  { %v1578_v53 = vmax.bf16 %v2593_v48, %v1574_v25  ;;  %v1580_v30 = vmax.bf16 %v2593_v48, %v1576_v26  ;;  %v1577_v33 = vmax.bf16 %v2593_v48, %v1573_v27  ;;  %v1579_v59 = vmax.bf16 %v2593_v48, %v1575_v28 }
 0x3d1   :  { %1876 = vmatprep.mubr.bf16.mxu0 %v1578_v53  ;;  %1916 = vmatprep.mubr.bf16.mxu1 %v1580_v30 }
 0x3d2   :  { %1877 = vmatmul.mubr.bf16.vlgmr.msra.gmra.mrb[8].mxu0 %v1577_v33  ;;  %1917 = vmatmul.mubr.bf16.vlgmr.msra.gmra.mrb[8].mxu1 %v1579_v59 }
 0x4a5   :  { %v2123_v34 = vpop.f32.mrb[8].mxu0  ;;  %v2145_v35 = vpop.f32.mrb[8].mxu1 }
 0x4a6   :  { %v2124_v37 = vpop.f32.mrb[9].mxu0  ;;  %v2146_v38 = vpop.f32.mrb[9].mxu1 }
 0x4a7   :  { %v2125_v54 = vadd.f32 %v2124_v37, %v2123_v34  ;;  %v2147_v0 = vadd.f32 %v2146_v38, %v2145_v35  ;;  %v2126_v4 = vpop.f32.mrb[10].mxu0  ;;  %v2148_v3 = vpop.f32.mrb[10].mxu1 }
 0x4a8   :  { %v2127_v11 = vpop.f32.mrb[11].mxu0  ;;  %v2149_v41 = vpop.f32.mrb[11].mxu1 }
 0x4a9   :  { %v1879_v42 = vadd.f32 %v2125_v54, %v2074_v36 }
 0x4ab   :  { %v1919_v48 = vadd.f32 %v2147_v0, %v1879_v42 }
 0x4ad   :  { %2414 = vtanh.f32 %v1919_v48 }
 0x4b7   :  { %v2415_v60 = vpop.eup %2414 }
 0x4b8   :  { %1925 = vst [vmem:[#allocation13] sm:$0xff] %v2415_v60 }
 0x4b9   :  { %2559 = shalt.err (!%p2556_p10)
}
 0x4ba   :  { %s2560_s29 = scalar_lea.hbm %s2896_s7, 128 }
 0x4bb   :  { %p2561_p11 = scmp.ne.s32.totalorder %s2896_s7, %s2560_s29  ;;  %p2564_p12 = scmp.lt.u32.totalorder %s2560_s29, %s2896_s7 }
 0x4bd   :  { %p2566_p13 = pnand %p2564_p12, %p2561_p11 }
 0x4bf   :  { %2569 = shalt.err (!%p2566_p13)
}
 0x4c0   :  { %1935 = dma.vmem_to_hbm [thread:$0]  %s1933_s26, 128, %s2896_s7, [#allocation4]  }
 0x4c1   :  { %2578 = dma.done.wait [#allocation4], 128  }
 0x4c2   :  { %2579 = vsyncadd [#allocation4], 4294967168 }
 0x4c3   :  { %1939 = vsyncpa [#allocation3], 1 }
 0x4c4   :  { %1940 = vsyncpa [#allocation6], 1 }
 0x4c5   :  { %1941 = vsyncpa [#allocation9], 1 }
 0x4c6   :  { %1942 = vsyncpa [#allocation12], 1 }
 0x4c7   :  { %1943 = vsyncpa [#allocation4], 1 }

</bundles_post_ra>
